<compile_context>
chip_gen: v6e
topology: v6e:2x2x1
jax: 0.10.0
libtpu: 0.0.40
codegen_flags: <defaults>
</compile_context>

<pallas_src>
import functools
import math

import numpy as np
import jax
import jax.numpy as jnp
from jax import lax
from jax.experimental import pallas as pl
from jax.experimental.pallas import tpu as pltpu


# ---------------------------------------------------------------------------
# Pallas kernel: dilated 3x3 conv (single K=9*Cin contraction over an in-VMEM
# im2col slab) -> tanh -> 1x1 conv -> tanh -> 1x1 conv -> sigmoid, with pixels
# (batch folded in) on the 128-lane axis.
# ---------------------------------------------------------------------------
def clnet_kernel(x_ref, w1_ref, b1_ref, w2_ref, b2_ref, w4_ref, b4_ref,
                 out_ref, col_ref, *, Wp, M_out, Nb, Cin):
    # x_ref  block : (Nb, Cin, Hp*Wp)    bf16  zero-padded images, flat spatial
    # col_ref      : (9*Cin, Nb*M_out)   bf16  VMEM im2col staging slab
    # out_ref block: (Nb, Cout, M_out)   bf16  pixels on the lane axis

    # Stage the 9 dilated taps of every image into the im2col slab.  Offsets
    # are static; the destination columns n*M_out are multiples of 128.
    for n in range(Nb):
        xn = x_ref.at[n]                               # Ref view (Cin, Lp)
        base = n * M_out
        for t in range(9):
            ky, kx = divmod(t, 3)
            off = 2 * ky * Wp + 2 * kx                 # static flat tap shift
            col_ref[t * Cin:(t + 1) * Cin, base:base + M_out] = \
                xn[:, off:off + M_out]

    # conv1: one (Cin, 9*Cin) @ (9*Cin, Nb*M_out) dot, f32 accumulation.
    h1 = jnp.dot(w1_ref[...], col_ref[...],
                 preferred_element_type=jnp.float32)
    h1 = jnp.tanh(h1 + b1_ref[...])                    # (Cin, Nb*M) f32, EUP

    # conv2 (1x1) + tanh
    h2 = jnp.dot(w2_ref[...], h1.astype(jnp.bfloat16),
                 preferred_element_type=jnp.float32)
    h2 = jnp.tanh(h2 + b2_ref[...])

    # conv4 (1x1) + sigmoid (EUP exp/recip, frees VALU slots)
    h4 = jnp.dot(w4_ref[...], h2.astype(jnp.bfloat16),
                 preferred_element_type=jnp.float32)
    y = jax.nn.sigmoid(h4 + b4_ref[...])               # (Cout, Nb*M) f32

    # Per-image lane-aligned (M_out % 128 == 0) unmasked bf16 stores.
    for n in range(Nb):
        out_ref[n] = y[:, n * M_out:(n + 1) * M_out].astype(out_ref.dtype)


# ---------------------------------------------------------------------------
# Wrapper: geometry / batching choices, padding, weight reshaping, pallas_call.
# ---------------------------------------------------------------------------
def clnet_forward(x, params, *, vmem_step_budget=4 * 1024 * 1024):
    """x: (N, Cin, H, W) float32 -> (N, Cout, H, W) float32."""
    w1, b1, w2, b2, w4, b4 = params
    N, Cin, H, W = x.shape
    Cout = w4.shape[0]

    # --- geometry ----------------------------------------------------------
    # Flat-offset tap trick needs: left/top pad 2, right pad >= 2, and 3 extra
    # bottom rows so every tap window [2*ky*Wp+2*kx, ..+H*Wp) stays inside the
    # flattened padded image even when discarded columns wrap a row.
    Wp_min = W + 4
    Wp = Wp_min
    # Prefer a Wp that makes H*Wp a multiple of 128 (lane-dense unmasked
    # stores) without blowing up the width too much.
    for cand in range(Wp_min, Wp_min + 129):
        if (H * cand) % 128 == 0 and cand <= max(Wp_min + 16, 2 * Wp_min):
            Wp = cand
            break
    Hp = H + 5
    Lp = Hp * Wp
    M_out = H * Wp
    assert Wp >= W + 4 and Hp >= H + 5, "flat-offset tap trick invariants"

    # --- per-step batching (Nb images per grid step) -----------------------
    # Rough per-image VMEM footprint: double-buffered bf16 in/out blocks +
    # im2col scratch + f32 intermediates.
    per_img = (2 * Cin * Lp * 2            # x block (double buffered, bf16)
               + 2 * Cout * M_out * 2      # out block (double buffered, bf16)
               + 9 * Cin * M_out * 2       # im2col scratch (bf16)
               + (3 * Cin + 2 * Cout) * M_out * 4)   # f32 temporaries
    assert per_img <= vmem_step_budget, (
        "one padded image exceeds the per-step VMEM budget; needs the "
        "row-blocked halo-DMA path")  # TODO(synk): implement halo tiling
    nb_cap = max(1, vmem_step_budget // per_img)
    if N >= 2:
        # keep grid length >= 2 so both v7x TensorCores get work
        nb_cap = max(1, min(nb_cap, N // 2))
    Nb = 1
    for d in range(1, N + 1):              # largest divisor of N <= nb_cap
        if N % d == 0 and d <= nb_cap:
            Nb = d
    G = N // Nb

    # --- pad + cast (candidate for input fusion into the pallas_call) ------
    pad_r = Wp - W - 2
    xp = jnp.pad(x.astype(jnp.bfloat16), ((0, 0), (0, 0), (2, 3), (2, pad_r)))
    x_flat = xp.reshape(N, Cin, Lp)

    # torch OIHW conv1 weight -> merged (Cin_out, 9*Cin_in) LHS, tap-major
    # columns matching the im2col slab row order (t*Cin + i).
    w1_flat = jnp.transpose(w1, (0, 2, 3, 1)).reshape(Cin, 9 * Cin)
    w1_flat = w1_flat.astype(jnp.bfloat16)
    w2m = w2.reshape(Cin, Cin).astype(jnp.bfloat16)
    w4m = w4.reshape(Cout, Cin).astype(jnp.bfloat16)
    b1m = b1.reshape(Cin, 1).astype(jnp.float32)
    b2m = b2.reshape(Cin, 1).astype(jnp.float32)
    b4m = b4.reshape(Cout, 1).astype(jnp.float32)

    kernel = functools.partial(clnet_kernel, Wp=Wp, M_out=M_out, Nb=Nb,
                               Cin=Cin)

    cost = pl.CostEstimate(
        flops=int(2 * N * M_out * (9 * Cin * Cin + Cin * Cin + Cout * Cin)),
        transcendentals=int(N * M_out * (2 * Cin + Cout)),
        bytes_accessed=int(N * Cin * Lp * 2 + N * Cout * M_out * 2
                           + (9 * Cin * Cin + Cin * Cin + Cout * Cin) * 2
                           + (2 * Cin + Cout) * 4),
    )

    out_flat = pl.pallas_call(
        kernel,
        out_shape=jax.ShapeDtypeStruct((N, Cout, M_out), jnp.bfloat16),
        grid_spec=pltpu.PrefetchScalarGridSpec(
            num_scalar_prefetch=0,
            grid=(G,),
            in_specs=[
                pl.BlockSpec((Nb, Cin, Lp),   lambda g: (g, 0, 0)),  # images
                pl.BlockSpec((Cin, 9 * Cin),  lambda g: (0, 0)),     # w1 merged
                pl.BlockSpec((Cin, 1),        lambda g: (0, 0)),     # b1
                pl.BlockSpec((Cin, Cin),      lambda g: (0, 0)),     # w2
                pl.BlockSpec((Cin, 1),        lambda g: (0, 0)),     # b2
                pl.BlockSpec((Cout, Cin),     lambda g: (0, 0)),     # w4
                pl.BlockSpec((Cout, 1),       lambda g: (0, 0)),     # b4
            ],
            out_specs=pl.BlockSpec((Nb, Cout, M_out), lambda g: (g, 0, 0)),
            scratch_shapes=[pltpu.VMEM((9 * Cin, Nb * M_out), jnp.bfloat16)],
        ),
        compiler_params=pltpu.CompilerParams(
            dimension_semantics=("parallel",),
            vmem_limit_bytes=32 * 1024 * 1024,
            # let XLA fuse the pad/cast/reshape producer into the image input
            allow_input_fusion=[True, False, False, False, False, False, False],
        ),
        cost_estimate=cost,
    )(x_flat, w1_flat, b1m, w2m, b2m, w4m, b4m)

    # (N, Cout, H*Wp) bf16 -> drop the width-halo columns -> NCHW f32.
    out = out_flat.reshape(N, Cout, H, Wp)[:, :, :, :W].astype(jnp.float32)
    return out


# ---------------------------------------------------------------------------
# Deterministic parameter init mirroring paramsInit (xavier_uniform weights,
# zero conv bias) and the nn.Conv2d shapes in clNet.__init__.
# ---------------------------------------------------------------------------
def init_params(key, input_size, output_size):
    def xavier_conv(k, cout, cin, kh, kw):
        fan_in, fan_out = cin * kh * kw, cout * kh * kw
        bound = math.sqrt(6.0 / (fan_in + fan_out))
        return jax.random.uniform(k, (cout, cin, kh, kw), jnp.float32,
                                  -bound, bound)

    k1, k2, k4 = jax.random.split(key, 3)
    w1 = xavier_conv(k1, input_size, input_size, 3, 3)
    b1 = jnp.zeros((input_size,), jnp.float32)
    w2 = xavier_conv(k2, input_size, input_size, 1, 1)
    b2 = jnp.zeros((input_size,), jnp.float32)
    w4 = xavier_conv(k4, output_size, input_size, 1, 1)
    b4 = jnp.zeros((output_size,), jnp.float32)
    return (w1, b1, w2, b2, w4, b4)


# ---------------------------------------------------------------------------
# Pure-JAX f32 reference (lax.conv) used to sanity-check the kernel.
# ---------------------------------------------------------------------------
def clnet_reference(x, params):
    w1, b1, w2, b2, w4, b4 = params
    dn = ("NCHW", "OIHW", "NCHW")
    h = lax.conv_general_dilated(x, w1, (1, 1), ((2, 2), (2, 2)),
                                 rhs_dilation=(2, 2), dimension_numbers=dn)
    h = jnp.tanh(h + b1[None, :, None, None])
    h = lax.conv_general_dilated(h, w2, (1, 1), ((0, 0), (0, 0)),
                                 dimension_numbers=dn)
    h = jnp.tanh(h + b2[None, :, None, None])
    h = lax.conv_general_dilated(h, w4, (1, 1), ((0, 0), (0, 0)),
                                 dimension_numbers=dn)
    return jax.nn.sigmoid(h + b4[None, :, None, None])


if __name__ == "__main__":
    key = jax.random.PRNGKey(0)
    kx_, kp_ = jax.random.split(key)

    # Small shapes consistent with the module's forward (NCHW conv input).
    N, Cin, H, W = 2, 4, 16, 16
    Cout = 6
    x = jax.random.normal(kx_, (N, Cin, H, W), jnp.float32)
    params = init_params(kp_, Cin, Cout)

    fwd = jax.jit(clnet_forward)
    out = jax.block_until_ready(fwd(x, params))
    assert out.shape == (N, Cout, H, W)

    ref = jax.block_until_ready(clnet_reference(x, params))
    # bf16 MXU inputs + bf16 output store vs f32 reference -> loose tolerance.
    np.testing.assert_allclose(np.asarray(out), np.asarray(ref),
                               rtol=1e-2, atol=3e-2)

    print("KERNEL_OK")
</pallas_src>

<mosaic_0001>
module attributes {stable_mosaic.version = 11 : i64} {
  func.func @clnet_kernel(%arg0: i32, %arg1: memref<1x4x504xbf16, #tpu.memory_space<vmem>>, %arg2: memref<4x36xbf16, #tpu.memory_space<vmem>>, %arg3: memref<4x1xf32, #tpu.memory_space<vmem>>, %arg4: memref<4x4xbf16, #tpu.memory_space<vmem>>, %arg5: memref<4x1xf32, #tpu.memory_space<vmem>>, %arg6: memref<6x4xbf16, #tpu.memory_space<vmem>>, %arg7: memref<6x1xf32, #tpu.memory_space<vmem>>, %arg8: memref<1x6x384xbf16, #tpu.memory_space<vmem>>, %arg9: memref<36x384xbf16, #tpu.memory_space<vmem>>) attributes {dimension_semantics = [#tpu.dimension_semantics<parallel>], iteration_bounds = array<i64: 2>, scalar_prefetch = 0 : i64, scratch_operands = 1 : i64, tpu.core_type = #tpu.core_type<tc>, window_params = [{transform_indices = @transform_0, window_bounds = array<i64: 1, 4, 504>}, {pipeline_mode = #tpu.pipeline_mode<synchronous>, transform_indices = @transform_1, window_bounds = array<i64: 4, 36>}, {pipeline_mode = #tpu.pipeline_mode<synchronous>, transform_indices = @transform_2, window_bounds = array<i64: 4, 1>}, {pipeline_mode = #tpu.pipeline_mode<synchronous>, transform_indices = @transform_3, window_bounds = array<i64: 4, 4>}, {pipeline_mode = #tpu.pipeline_mode<synchronous>, transform_indices = @transform_4, window_bounds = array<i64: 4, 1>}, {pipeline_mode = #tpu.pipeline_mode<synchronous>, transform_indices = @transform_5, window_bounds = array<i64: 6, 4>}, {pipeline_mode = #tpu.pipeline_mode<synchronous>, transform_indices = @transform_6, window_bounds = array<i64: 6, 1>}, {transform_indices = @transform_7, window_bounds = array<i64: 1, 6, 384>}]} {
    %c0_i32 = arith.constant 0 : i32
    %c0_i32_0 = arith.constant 0 : i32
    %c0_i32_1 = arith.constant 0 : i32
    %0 = tpu.memref_slice %arg1[%c0_i32, %c0_i32_0, %c0_i32_1] : memref<1x4x504xbf16, #tpu.memory_space<vmem>> -> memref<1x4x504xbf16, #tpu.memory_space<vmem>>
    %1 = tpu.memref_squeeze %0 : memref<1x4x504xbf16, #tpu.memory_space<vmem>> -> memref<4x504xbf16, #tpu.memory_space<vmem>>
    %c0 = arith.constant 0 : index
    %c0_2 = arith.constant 0 : index
    %2 = vector.load %1[%c0, %c0_2] : memref<4x504xbf16, #tpu.memory_space<vmem>>, vector<4x384xbf16>
    %c0_3 = arith.constant 0 : index
    %c0_4 = arith.constant 0 : index
    %3 = vector.load %arg9[%c0_3, %c0_4] : memref<36x384xbf16, #tpu.memory_space<vmem>>, vector<4x384xbf16>
    tpu.vector_store %arg9[%c0_3, %c0_4], %2 {strides = array<i32>} : memref<36x384xbf16, #tpu.memory_space<vmem>>, vector<4x384xbf16>,
    %c0_i32_5 = arith.constant 0 : i32
    %c0_i32_6 = arith.constant 0 : i32
    %c0_i32_7 = arith.constant 0 : i32
    %4 = tpu.memref_slice %arg1[%c0_i32_5, %c0_i32_6, %c0_i32_7] : memref<1x4x504xbf16, #tpu.memory_space<vmem>> -> memref<1x4x504xbf16, #tpu.memory_space<vmem>>
    %5 = tpu.memref_squeeze %4 : memref<1x4x504xbf16, #tpu.memory_space<vmem>> -> memref<4x504xbf16, #tpu.memory_space<vmem>>
    %c0_8 = arith.constant 0 : index
    %c2 = arith.constant 2 : index
    %6 = vector.load %5[%c0_8, %c2] : memref<4x504xbf16, #tpu.memory_space<vmem>>, vector<4x384xbf16>
    %c4 = arith.constant 4 : index
    %c0_9 = arith.constant 0 : index
    %7 = vector.load %arg9[%c4, %c0_9] : memref<36x384xbf16, #tpu.memory_space<vmem>>, vector<4x384xbf16>
    tpu.vector_store %arg9[%c4, %c0_9], %6 {strides = array<i32>} : memref<36x384xbf16, #tpu.memory_space<vmem>>, vector<4x384xbf16>,
    %c0_i32_10 = arith.constant 0 : i32
    %c0_i32_11 = arith.constant 0 : i32
    %c0_i32_12 = arith.constant 0 : i32
    %8 = tpu.memref_slice %arg1[%c0_i32_10, %c0_i32_11, %c0_i32_12] : memref<1x4x504xbf16, #tpu.memory_space<vmem>> -> memref<1x4x504xbf16, #tpu.memory_space<vmem>>
    %9 = tpu.memref_squeeze %8 : memref<1x4x504xbf16, #tpu.memory_space<vmem>> -> memref<4x504xbf16, #tpu.memory_space<vmem>>
    %c0_13 = arith.constant 0 : index
    %c4_14 = arith.constant 4 : index
    %10 = vector.load %9[%c0_13, %c4_14] : memref<4x504xbf16, #tpu.memory_space<vmem>>, vector<4x384xbf16>
    %c8 = arith.constant 8 : index
    %c0_15 = arith.constant 0 : index
    %11 = vector.load %arg9[%c8, %c0_15] : memref<36x384xbf16, #tpu.memory_space<vmem>>, vector<4x384xbf16>
    tpu.vector_store %arg9[%c8, %c0_15], %10 {strides = array<i32>} : memref<36x384xbf16, #tpu.memory_space<vmem>>, vector<4x384xbf16>,
    %c0_i32_16 = arith.constant 0 : i32
    %c0_i32_17 = arith.constant 0 : i32
    %c0_i32_18 = arith.constant 0 : i32
    %12 = tpu.memref_slice %arg1[%c0_i32_16, %c0_i32_17, %c0_i32_18] : memref<1x4x504xbf16, #tpu.memory_space<vmem>> -> memref<1x4x504xbf16, #tpu.memory_space<vmem>>
    %13 = tpu.memref_squeeze %12 : memref<1x4x504xbf16, #tpu.memory_space<vmem>> -> memref<4x504xbf16, #tpu.memory_space<vmem>>
    %c0_19 = arith.constant 0 : index
    %c48 = arith.constant 48 : index
    %14 = vector.load %13[%c0_19, %c48] : memref<4x504xbf16, #tpu.memory_space<vmem>>, vector<4x384xbf16>
    %c12 = arith.constant 12 : index
    %c0_20 = arith.constant 0 : index
    %15 = vector.load %arg9[%c12, %c0_20] : memref<36x384xbf16, #tpu.memory_space<vmem>>, vector<4x384xbf16>
    tpu.vector_store %arg9[%c12, %c0_20], %14 {strides = array<i32>} : memref<36x384xbf16, #tpu.memory_space<vmem>>, vector<4x384xbf16>,
    %c0_i32_21 = arith.constant 0 : i32
    %c0_i32_22 = arith.constant 0 : i32
    %c0_i32_23 = arith.constant 0 : i32
    %16 = tpu.memref_slice %arg1[%c0_i32_21, %c0_i32_22, %c0_i32_23] : memref<1x4x504xbf16, #tpu.memory_space<vmem>> -> memref<1x4x504xbf16, #tpu.memory_space<vmem>>
    %17 = tpu.memref_squeeze %16 : memref<1x4x504xbf16, #tpu.memory_space<vmem>> -> memref<4x504xbf16, #tpu.memory_space<vmem>>
    %c0_24 = arith.constant 0 : index
    %c50 = arith.constant 50 : index
    %18 = vector.load %17[%c0_24, %c50] : memref<4x504xbf16, #tpu.memory_space<vmem>>, vector<4x384xbf16>
    %c16 = arith.constant 16 : index
    %c0_25 = arith.constant 0 : index
    %19 = vector.load %arg9[%c16, %c0_25] : memref<36x384xbf16, #tpu.memory_space<vmem>>, vector<4x384xbf16>
    tpu.vector_store %arg9[%c16, %c0_25], %18 {strides = array<i32>} : memref<36x384xbf16, #tpu.memory_space<vmem>>, vector<4x384xbf16>,
    %c0_i32_26 = arith.constant 0 : i32
    %c0_i32_27 = arith.constant 0 : i32
    %c0_i32_28 = arith.constant 0 : i32
    %20 = tpu.memref_slice %arg1[%c0_i32_26, %c0_i32_27, %c0_i32_28] : memref<1x4x504xbf16, #tpu.memory_space<vmem>> -> memref<1x4x504xbf16, #tpu.memory_space<vmem>>
    %21 = tpu.memref_squeeze %20 : memref<1x4x504xbf16, #tpu.memory_space<vmem>> -> memref<4x504xbf16, #tpu.memory_space<vmem>>
    %c0_29 = arith.constant 0 : index
    %c52 = arith.constant 52 : index
    %22 = vector.load %21[%c0_29, %c52] : memref<4x504xbf16, #tpu.memory_space<vmem>>, vector<4x384xbf16>
    %c20 = arith.constant 20 : index
    %c0_30 = arith.constant 0 : index
    %23 = vector.load %arg9[%c20, %c0_30] : memref<36x384xbf16, #tpu.memory_space<vmem>>, vector<4x384xbf16>
    tpu.vector_store %arg9[%c20, %c0_30], %22 {strides = array<i32>} : memref<36x384xbf16, #tpu.memory_space<vmem>>, vector<4x384xbf16>,
    %c0_i32_31 = arith.constant 0 : i32
    %c0_i32_32 = arith.constant 0 : i32
    %c0_i32_33 = arith.constant 0 : i32
    %24 = tpu.memref_slice %arg1[%c0_i32_31, %c0_i32_32, %c0_i32_33] : memref<1x4x504xbf16, #tpu.memory_space<vmem>> -> memref<1x4x504xbf16, #tpu.memory_space<vmem>>
    %25 = tpu.memref_squeeze %24 : memref<1x4x504xbf16, #tpu.memory_space<vmem>> -> memref<4x504xbf16, #tpu.memory_space<vmem>>
    %c0_34 = arith.constant 0 : index
    %c96 = arith.constant 96 : index
    %26 = vector.load %25[%c0_34, %c96] : memref<4x504xbf16, #tpu.memory_space<vmem>>, vector<4x384xbf16>
    %c24 = arith.constant 24 : index
    %c0_35 = arith.constant 0 : index
    %27 = vector.load %arg9[%c24, %c0_35] : memref<36x384xbf16, #tpu.memory_space<vmem>>, vector<4x384xbf16>
    tpu.vector_store %arg9[%c24, %c0_35], %26 {strides = array<i32>} : memref<36x384xbf16, #tpu.memory_space<vmem>>, vector<4x384xbf16>,
    %c0_i32_36 = arith.constant 0 : i32
    %c0_i32_37 = arith.constant 0 : i32
    %c0_i32_38 = arith.constant 0 : i32
    %28 = tpu.memref_slice %arg1[%c0_i32_36, %c0_i32_37, %c0_i32_38] : memref<1x4x504xbf16, #tpu.memory_space<vmem>> -> memref<1x4x504xbf16, #tpu.memory_space<vmem>>
    %29 = tpu.memref_squeeze %28 : memref<1x4x504xbf16, #tpu.memory_space<vmem>> -> memref<4x504xbf16, #tpu.memory_space<vmem>>
    %c0_39 = arith.constant 0 : index
    %c98 = arith.constant 98 : index
    %30 = vector.load %29[%c0_39, %c98] : memref<4x504xbf16, #tpu.memory_space<vmem>>, vector<4x384xbf16>
    %c28 = arith.constant 28 : index
    %c0_40 = arith.constant 0 : index
    %31 = vector.load %arg9[%c28, %c0_40] : memref<36x384xbf16, #tpu.memory_space<vmem>>, vector<4x384xbf16>
    tpu.vector_store %arg9[%c28, %c0_40], %30 {strides = array<i32>} : memref<36x384xbf16, #tpu.memory_space<vmem>>, vector<4x384xbf16>,
    %c0_i32_41 = arith.constant 0 : i32
    %c0_i32_42 = arith.constant 0 : i32
    %c0_i32_43 = arith.constant 0 : i32
    %32 = tpu.memref_slice %arg1[%c0_i32_41, %c0_i32_42, %c0_i32_43] : memref<1x4x504xbf16, #tpu.memory_space<vmem>> -> memref<1x4x504xbf16, #tpu.memory_space<vmem>>
    %33 = tpu.memref_squeeze %32 : memref<1x4x504xbf16, #tpu.memory_space<vmem>> -> memref<4x504xbf16, #tpu.memory_space<vmem>>
    %c0_44 = arith.constant 0 : index
    %c100 = arith.constant 100 : index
    %34 = vector.load %33[%c0_44, %c100] : memref<4x504xbf16, #tpu.memory_space<vmem>>, vector<4x384xbf16>
    %c32 = arith.constant 32 : index
    %c0_45 = arith.constant 0 : index
    %35 = vector.load %arg9[%c32, %c0_45] : memref<36x384xbf16, #tpu.memory_space<vmem>>, vector<4x384xbf16>
    tpu.vector_store %arg9[%c32, %c0_45], %34 {strides = array<i32>} : memref<36x384xbf16, #tpu.memory_space<vmem>>, vector<4x384xbf16>,
    %c0_46 = arith.constant 0 : index
    %c0_47 = arith.constant 0 : index
    %36 = vector.load %arg2[%c0_46, %c0_47] : memref<4x36xbf16, #tpu.memory_space<vmem>>, vector<4x36xbf16>
    %c0_48 = arith.constant 0 : index
    %c0_49 = arith.constant 0 : index
    %37 = vector.load %arg9[%c0_48, %c0_49] : memref<36x384xbf16, #tpu.memory_space<vmem>>, vector<36x384xbf16>
    %cst = arith.constant dense<0.000000e+00> : vector<4x384xf32>
    %38 = tpu.matmul %36, %37, %cst {dimension_numbers = #tpu.dot_dimension_numbers<[1], [0], [0], [1], [0, 0, 1, 1], [], []>} : vector<4x36xbf16>, vector<36x384xbf16>, vector<4x384xf32> -> vector<4x384xf32>
    %c0_50 = arith.constant 0 : index
    %c0_51 = arith.constant 0 : index
    %39 = vector.load %arg3[%c0_50, %c0_51] : memref<4x1xf32, #tpu.memory_space<vmem>>, vector<4x1xf32>
    %40 = vector.broadcast %39 : vector<4x1xf32> to vector<4x384xf32>
    %41 = arith.addf %38, %40 : vector<4x384xf32>
    %42 = math.tanh %41 : vector<4x384xf32>
    %c0_52 = arith.constant 0 : index
    %c0_53 = arith.constant 0 : index
    %43 = vector.load %arg4[%c0_52, %c0_53] : memref<4x4xbf16, #tpu.memory_space<vmem>>, vector<4x4xbf16>
    %44 = arith.truncf %42 : vector<4x384xf32> to vector<4x384xbf16>
    %cst_54 = arith.constant dense<0.000000e+00> : vector<4x384xf32>
    %45 = tpu.matmul %43, %44, %cst_54 {dimension_numbers = #tpu.dot_dimension_numbers<[1], [0], [0], [1], [0, 0, 1, 1], [], []>} : vector<4x4xbf16>, vector<4x384xbf16>, vector<4x384xf32> -> vector<4x384xf32>
    %c0_55 = arith.constant 0 : index
    %c0_56 = arith.constant 0 : index
    %46 = vector.load %arg5[%c0_55, %c0_56] : memref<4x1xf32, #tpu.memory_space<vmem>>, vector<4x1xf32>
    %47 = vector.broadcast %46 : vector<4x1xf32> to vector<4x384xf32>
    %48 = arith.addf %45, %47 : vector<4x384xf32>
    %49 = math.tanh %48 : vector<4x384xf32>
    %c0_57 = arith.constant 0 : index
    %c0_58 = arith.constant 0 : index
    %50 = vector.load %arg6[%c0_57, %c0_58] : memref<6x4xbf16, #tpu.memory_space<vmem>>, vector<6x4xbf16>
    %51 = arith.truncf %49 : vector<4x384xf32> to vector<4x384xbf16>
    %cst_59 = arith.constant dense<0.000000e+00> : vector<6x384xf32>
    %52 = tpu.matmul %50, %51, %cst_59 {dimension_numbers = #tpu.dot_dimension_numbers<[1], [0], [0], [1], [0, 0, 1, 1], [], []>} : vector<6x4xbf16>, vector<4x384xbf16>, vector<6x384xf32> -> vector<6x384xf32>
    %c0_60 = arith.constant 0 : index
    %c0_61 = arith.constant 0 : index
    %53 = vector.load %arg7[%c0_60, %c0_61] : memref<6x1xf32, #tpu.memory_space<vmem>>, vector<6x1xf32>
    %54 = vector.broadcast %53 : vector<6x1xf32> to vector<6x384xf32>
    %55 = arith.addf %52, %54 : vector<6x384xf32>
    %56 = arith.negf %55 : vector<6x384xf32>
    %57 = math.exp %56 : vector<6x384xf32>
    %cst_62 = arith.constant 1.000000e+00 : f32
    %58 = vector.broadcast %cst_62 : f32 to vector<6x384xf32>
    %59 = arith.addf %58, %57 : vector<6x384xf32>
    %60 = arith.divf %58, %59 : vector<6x384xf32>
    %61 = arith.truncf %60 : vector<6x384xf32> to vector<6x384xbf16>
    %c0_63 = arith.constant 0 : index
    %c0_64 = arith.constant 0 : index
    %c0_65 = arith.constant 0 : index
    %62 = vector.load %arg8[%c0_63, %c0_64, %c0_65] : memref<1x6x384xbf16, #tpu.memory_space<vmem>>, vector<1x6x384xbf16>
    %63 = vector.shape_cast %62 : vector<1x6x384xbf16> to vector<6x384xbf16>
    %64 = vector.shape_cast %61 : vector<6x384xbf16> to vector<1x6x384xbf16>
    tpu.vector_store %arg8[%c0_63, %c0_64, %c0_65], %64 {strides = array<i32>} : memref<1x6x384xbf16, #tpu.memory_space<vmem>>, vector<1x6x384xbf16>,
    return
  }
  func.func @transform_0(%arg0: i32) -> (i32, i32, i32) {
    %c0_i32 = arith.constant 0 : i32
    %c0_i32_0 = arith.constant 0 : i32
    %c0_i32_1 = arith.constant 0 : i32
    return %arg0, %c0_i32, %c0_i32_0 : i32, i32, i32
  }
  func.func @transform_1(%arg0: i32) -> (i32, i32) {
    %c0_i32 = arith.constant 0 : i32
    %c0_i32_0 = arith.constant 0 : i32
    %c0_i32_1 = arith.constant 0 : i32
    return %c0_i32, %c0_i32_0 : i32, i32
  }
  func.func @transform_2(%arg0: i32) -> (i32, i32) {
    %c0_i32 = arith.constant 0 : i32
    %c0_i32_0 = arith.constant 0 : i32
    %c0_i32_1 = arith.constant 0 : i32
    return %c0_i32, %c0_i32_0 : i32, i32
  }
  func.func @transform_3(%arg0: i32) -> (i32, i32) {
    %c0_i32 = arith.constant 0 : i32
    %c0_i32_0 = arith.constant 0 : i32
    %c0_i32_1 = arith.constant 0 : i32
    return %c0_i32, %c0_i32_0 : i32, i32
  }
  func.func @transform_4(%arg0: i32) -> (i32, i32) {
    %c0_i32 = arith.constant 0 : i32
    %c0_i32_0 = arith.constant 0 : i32
    %c0_i32_1 = arith.constant 0 : i32
    return %c0_i32, %c0_i32_0 : i32, i32
  }
  func.func @transform_5(%arg0: i32) -> (i32, i32) {
    %c0_i32 = arith.constant 0 : i32
    %c0_i32_0 = arith.constant 0 : i32
    %c0_i32_1 = arith.constant 0 : i32
    return %c0_i32, %c0_i32_0 : i32, i32
  }
  func.func @transform_6(%arg0: i32) -> (i32, i32) {
    %c0_i32 = arith.constant 0 : i32
    %c0_i32_0 = arith.constant 0 : i32
    %c0_i32_1 = arith.constant 0 : i32
    return %c0_i32, %c0_i32_0 : i32, i32
  }
  func.func @transform_7(%arg0: i32) -> (i32, i32, i32) {
    %c0_i32 = arith.constant 0 : i32
    %c0_i32_0 = arith.constant 0 : i32
    %c0_i32_1 = arith.constant 0 : i32
    return %arg0, %c0_i32, %c0_i32_0 : i32, i32, i32
  }
}

</mosaic_0001>

<bundles_post_ra>
// kernel: clnet_forward.1
= control target key start
LH: loop header
LB: loop body
LE: loop exit
PB: predicated region body
PF: predicated region fallthrough
CT: control target
= control target key end

     0   :  { %s1192_s24 = smov 0   ;;  %s1270_s0 = inlined_call_operand.vmem [shape: bf16[2,4,504], index: 0, kind: input, shape index: {}]   ;;  %s1271_s1 = inlined_call_operand.vmem [shape: bf16[4,36], index: 1, kind: input, shape index: {}]   ;;  %s1272_s2 = inlined_call_operand.vmem [shape: f32[4,1], index: 2, kind: input, shape index: {}]   ;;  %s1273_s3 = inlined_call_operand.vmem [shape: bf16[4,4], index: 3, kind: input, shape index: {}]   ;;  %s1274_s4 = inlined_call_operand.vmem [shape: f32[4,1], index: 4, kind: input, shape index: {}]   ;;  %s1275_s5 = inlined_call_operand.vmem [shape: bf16[6,4], index: 5, kind: input, shape index: {}]   ;;  %s1276_s6 = inlined_call_operand.vmem [shape: f32[6,1], index: 6, kind: input, shape index: {}]   ;;  %s1277_s7 = inlined_call_operand.vmem [shape: bf16[2,6,384], index: 7, kind: output, shape index: {}]  }
   0x1 LB: > { %s1003_s25 = sadd.s32 4294967295, %s1138_s24   ;;  %p1007_p0 = scmp.ge.s32.totalorder %s1138_s24, 1  ;;  %s1138_s24 = sphi %s1192_s24, %s17_s24  }
   0x2   : > { %p237_p1 = scmp.lt.s32.totalorder %s1138_s24, 3 }
   0x4   : > { %p238_p2 = pnand %p1007_p0, %p237_p1 }
   0x5   : > { %p269_p3 = scmp.lt.s32.totalorder (!%p238_p2), %s1003_s25, 1  ;;  %s1141_s30 = smov (!%p238_p2), 28  }
   0x6   : > { %241 = sbr.rel (%p238_p2) target bundleno = 845 (0x34d), region = 48  ;;  %s1142_s8 = smov (!%p238_p2), 78  }
   0x7   : > { %s1144_s9 = smov (!%p238_p2), 76   ;;  %s1145_s10 = smov (!%p238_p2), 32  }
   0x8   : > { %s1146_s11 = smov (!%p238_p2), 30   ;;  %s1147_s12 = smov (!%p238_p2), 126  }
   0x9   : > { %s1148_s13 = smov (!%p238_p2), 124   ;;  %s1149_s14 = smov (!%p238_p2), 80  }
   0xb   : > { %v307_v0 = vlaneseq  ;;  %v1140_v1 = vmov 1983009808   ;;  %s1279_s25 = smov (!%p269_p3, %s1003_s25), 1  ;;  %v1143_v11 = vmov 0.0   ;;  %vm1150_vm0 = vmmov 0  }
   0xc   : > { %v305_v2 = vunpack.c.l.s4 %v1140_v1  ;;  %s1038_s26 = sshll.u32 %s1279_s25, 3  ;;  %1049 = vmatprep.subr.bf16.mxu1 %v1143_v11  ;;  %1055 = vmatprep.mubr.msk.bf16.mxu1 %vm1150_vm0, %v1143_v11  ;;  %v1151_v15 = vmov 0   ;;  %v561_v16 = vld [vmem:[%s1272_s2] sm:$0xf]  ;;  %vm324_vm1 = vcmask 1043456   ;;  %vm543_vm2 = vcmask 228352  }
   0xd   : > { %v308_v3 = vshrl.u32 %v307_v0, 7  ;;  %s273_s29 = scalar_lea.vmem %s1270_s0, %s1038_s26  ;;  %653 = vmatprep.mubr.bf16.mxu0 %v1151_v15  ;;  %1092 = vset.pattern.permute.xlu0 %v1151_v15  ;;  %vm450_vm3 = vcmask 621568   ;;  %vm419_vm4 = vcmask 637952   ;;  %vm481_vm5 = vcmask 261120  }
   0xe   : > { %v306_v4 = vunpack.c.0.s8 %v305_v2  ;;  %v519_v6 = vld [vmem:[%s273_s29] sm:$0xff]  ;;  %1093 = vset.pattern.permute.xlu1 %v1151_v15  ;;  %vm611_vm6 = vcmask 1041408   ;;  %vm512_vm7 = vcmask 244736   ;;  %vm326_vm8 = vcmask 1031168  }
   0xf   : > { %v521_v8 = vcombine.high %v519_v6, %v519_v6  ;;  %v428_v10 = vcombine.low %v519_v6, %v519_v6  ;;  %v280_v13 = vld [vmem:[%s273_s29] sm:$0x3f]  ;;  %vm357_vm9 = vcmask 1014784   ;;  %vm388_vm10 = vcmask 654336   ;;  %s1071_s29 = smul.u32 12, %s1279_s25 }
  0x10   : > { %v309_v5 = vsub.s32 %v306_v4, %v308_v3  ;;  %v282_v14 = vcombine.high %v280_v13, %v280_v13  ;;  %1011 = vst.sshfl [vmem:[#allocation2] sm:$0xf pattern:$0x76325410] %v280_v13  ;;  %vm607_vm11 = vcmask 293888   ;;  %vm715_vm12 = vcmask 31744  }
  0x12   : > { %v528_v7 = vrot.slane %v519_v6, %v309_v5  ;;  %v535_v9 = vrot.slane %v521_v8, %v309_v5  ;;  %v435_v12 = vrot.slane %v428_v10, %v309_v5  ;;  %1012 = vst.sshfl [vmem:[#allocation2 + $0x8] sm:$0x3 pattern:$0x76325410] %v282_v14 }
  0x14   : > { %536 = vrot.lane.b32.xlu0 %v528_v7, %s1141_s30  ;;  %412 = vrot.lane.b32.xlu1 %v528_v7, %s1142_s8 }
  0x18   : > { %538 = vrot.lane.b32.xlu0 %v535_v9, %s1141_s30  ;;  %445 = vrot.lane.b32.xlu1 %v528_v7, %s1144_s9 }
  0x1c   : > { %443 = vrot.lane.b32.xlu0 %v435_v12, %s1144_s9  ;;  %414 = vrot.lane.b32.xlu1 %v535_v9, %s1142_s8  ;;  %s278_s9 = scalar_lea.vmem %s1277_s7, %s1071_s29 }
  0x20   : > { %474 = vrot.lane.b32.xlu0 %v528_v7, %s1145_s10  ;;  %476 = vrot.lane.b32.xlu1 %v535_v9, %s1145_s10 }
  0x24   : > { %505 = vrot.lane.b32.xlu0 %v435_v12, %s1146_s11  ;;  %507 = vrot.lane.b32.xlu1 %v528_v7, %s1146_s11 }
  0x28   : > { %320 = vrot.lane.b32.xlu1 %v528_v7, %s1147_s12  ;;  %318 = vrot.lane.b32.xlu0 %v435_v12, %s1147_s12 }
  0x2c   : > { %352 = vrot.lane.b32.xlu1 %v535_v9, %s1148_s13  ;;  %350 = vrot.lane.b32.xlu0 %v528_v7, %s1148_s13 }
  0x30   : > { %383 = vrot.lane.b32.xlu1 %v528_v7, %s1149_s14  ;;  %381 = vrot.lane.b32.xlu0 %v435_v12, %s1149_s14 }
  0x34   : > { %564 = vperm.xlu0 %1092, %v561_v16  }
  0x86   : > { %v537_v17 = vpop.permute.xlu0 %536  ;;  %v413_v18 = vpop.permute.xlu1 %412 }
  0x87   : > { %v540_v21 = vrot.slane %v537_v17, 4  ;;  %v416_v30 = vrot.slane %v413_v18, 4 }
  0x8a   : > { %v539_v19 = vpop.permute.xlu0 %538  ;;  %v446_v20 = vpop.permute.xlu1 %445 }
  0x8b   : > { %v541_v22 = vrot.slane %v539_v19, 4  ;;  %v448_v23 = vrot.slane %v446_v20, 4 }
  0x8d   : > { %v542_v24 = vsel %vm324_vm1, %v540_v21, %v541_v22  ;;  %v545_v25 = vsel %vm543_vm2, %v539_v19, %v541_v22  ;;  %v452_v26 = vsel %vm450_vm3, %v446_v20, %v448_v23 }
  0x8e   : > { %v544_v27 = vsel %vm543_vm2, %v537_v17, %v542_v24  ;;  %549 = vst [vmem:[#allocation2 + $0x38] sm:$0x3] %v545_v25  ;;  %456 = vst [vmem:[#allocation2 + $0x20] sm:$0xc] %v452_v26  ;;  %v444_v28 = vpop.permute.xlu0 %443  ;;  %v415_v29 = vpop.permute.xlu1 %414  ;;  %v709_v24 = vld [vmem:[%s1274_s4] sm:$0xf] }
  0x8f   : > { %548 = vst [vmem:[#allocation2 + $0x30] sm:$0x33] %v544_v27  ;;  %v447_v31 = vrot.slane %v444_v28, 4  ;;  %v417_v32 = vrot.slane %v415_v29, 4  ;;  %712 = vperm.xlu1 %1093, %v709_v24   ;;  %v816_v25 = vld [vmem:[%s1276_s6] sm:$0x3f] }
  0x91   : > { %v449_v33 = vsel %vm324_vm1, %v447_v31, %v448_v23  ;;  %v418_v34 = vsel %vm324_vm1, %v416_v30, %v417_v32  ;;  %v421_v35 = vsel %vm419_vm4, %v415_v29, %v417_v32  ;;  %v550_v23 = vld [vmem:[%s1271_s1] sm:$0x3] }
  0x92   : > { %v451_v36 = vsel %vm450_vm3, %v444_v28, %v449_v33  ;;  %v420_v37 = vsel %vm419_vm4, %v413_v18, %v418_v34  ;;  %425 = vst [vmem:[#allocation2 + $0x20] sm:$0x3] %v421_v35  ;;  %v475_v38 = vpop.permute.xlu0 %474  ;;  %v477_v39 = vpop.permute.xlu1 %476 }
  0x93   : > { %455 = vst [vmem:[#allocation2 + $0x18] sm:$0xcc] %v451_v36  ;;  %424 = vst [vmem:[#allocation2 + $0x18] sm:$0x33] %v420_v37  ;;  %v478_v40 = vrot.slane %v475_v38, 4  ;;  %v479_v41 = vrot.slane %v477_v39, 4  ;;  %819 = vperm.xlu1 %1093, %v816_v25  }
  0x95   : > { %v480_v42 = vsel %vm324_vm1, %v478_v40, %v479_v41  ;;  %v483_v43 = vsel %vm481_vm5, %v477_v39, %v479_v41  ;;  %v1097_v44 = vld [vmem:[#allocation2 + $0x38] ss:$0 sps:$4 sm:$0x33]  }
  0x96   : > { %v482_v45 = vsel %vm481_vm5, %v475_v38, %v480_v42  ;;  %487 = vst [vmem:[#allocation2 + $0x2c] sm:$0x3] %v483_v43  ;;  %v506_v46 = vpop.permute.xlu0 %505  ;;  %v508_v47 = vpop.permute.xlu1 %507  ;;  %v559_v48 = vld [vmem:[#allocation2 + $0x30] sm:$0x33]  ;;  %v619_v52 = vsel %vm611_vm6, %v1097_v44, 0 }
  0x97   : > { %486 = vst [vmem:[#allocation2 + $0x24] sm:$0x33] %v482_v45  ;;  %v509_v49 = vrot.slane %v506_v46, 4  ;;  %v510_v50 = vrot.slane %v508_v47, 4  ;;  %v1020_v51 = vcombine.high %v559_v48, %v559_v48  ;;  %1050 = vmatpush3.bf16.msra.mxu1 %v619_v52  ;;  %v1019_v53 = vcombine.low %v559_v48, %v559_v48  ;;  %v705_v44 = vld [vmem:[%s1273_s3] sm:$0x3] }
  0x98   : > { %1051 = vmatprep.subr.bf16.mxu1 %v1143_v11 }
  0x99   : > { %v511_v54 = vsel %vm324_vm1, %v509_v49, %v510_v50  ;;  %v514_v55 = vsel %vm512_vm7, %v508_v47, %v510_v50  ;;  %1022 = vmatprep.subr.msk.bf16.mxu0 %vm611_vm6, %v1020_v51  ;;  %v613_v57 = vsel %vm611_vm6, %v1019_v53, 0 }
  0x9a   : > { %v513_v56 = vsel %vm512_vm7, %v506_v46, %v511_v54  ;;  %518 = vst [vmem:[#allocation2 + $0x2c] sm:$0xc] %v514_v55  ;;  %v321_v58 = vpop.permute.xlu1 %320  ;;  %v319_v59 = vpop.permute.xlu0 %318  ;;  %632 = vmatpush1.bf16.msra.mxu0 %v613_v57 }
  0x9b   : > { %517 = vst [vmem:[#allocation2 + $0x24] sm:$0xcc] %v513_v56  ;;  %v323_v60 = vrot.slane %v321_v58, 4  ;;  %v322_v61 = vrot.slane %v319_v59, 4 }
  0x9d   : > { %v328_v62 = vsel %vm326_vm8, %v321_v58, %v323_v60  ;;  %v325_v63 = vsel %vm324_vm1, %v322_v61, %v323_v60  ;;  %v812_v61 = vld [vmem:[%s1275_s5] sm:$0x7] }
  0x9e   : > { %332 = vst [vmem:[#allocation2 + $0x8] sm:$0xc] %v328_v62  ;;  %v327_v0 = vsel %vm326_vm8, %v319_v59, %v325_v63  ;;  %v353_v1 = vpop.permute.xlu1 %352  ;;  %v351_v2 = vpop.permute.xlu0 %350 }
  0x9f   : > { %331 = vst [vmem:[#allocation2] sm:$0xcc] %v327_v0  ;;  %v355_v3 = vrot.slane %v353_v1, 4  ;;  %v354_v4 = vrot.slane %v351_v2, 4 }
  0xa1   : > { %v359_v5 = vsel %vm357_vm9, %v353_v1, %v355_v3  ;;  %v356_v6 = vsel %vm324_vm1, %v354_v4, %v355_v3  ;;  %v1099_v7 = vld [vmem:[#allocation2 + $0x20] ss:$12 sps:$4 sm:$0xff]  }
  0xa2   : > { %363 = vst [vmem:[#allocation2 + $0x14] sm:$0x3] %v359_v5  ;;  %v358_v8 = vsel %vm357_vm9, %v351_v2, %v356_v6  ;;  %v384_v9 = vpop.permute.xlu1 %383  ;;  %v382_v10 = vpop.permute.xlu0 %381  ;;  %v1100_v12 = vld [vmem:[#allocation2 + $0x1c] ss:$12 sps:$4 sm:$0xff]   ;;  %v1102_v13 = vld [vmem:[#allocation2 + $0x18] ss:$12 sps:$4 sm:$0xff]   ;;  %1052 = vmatpush3.bf16.msra.mxu1 %v1099_v7 }
  0xa3   : > { %362 = vst [vmem:[#allocation2 + $0xc] sm:$0x33] %v358_v8  ;;  %v386_v14 = vrot.slane %v384_v9, 4  ;;  %v385_v16 = vrot.slane %v382_v10, 4  ;;  %633 = vmatprep.subr.bf16.mxu0 %v1100_v12  ;;  %1053 = vmatprep.subr.bf16.mxu1 %v1143_v11 }
  0xa4   : > { %634 = vmatpush1.bf16.msra.mxu0 %v1102_v13 }
  0xa5   : > { %v390_v17 = vsel %vm388_vm10, %v384_v9, %v386_v14  ;;  %v387_v18 = vsel %vm324_vm1, %v385_v16, %v386_v14 }
  0xa6   : > { %394 = vst [vmem:[#allocation2 + $0x14] sm:$0xc] %v390_v17  ;;  %v389_v19 = vsel %vm388_vm10, %v382_v10, %v387_v18 }
  0xa7   : > { %393 = vst [vmem:[#allocation2 + $0xc] sm:$0xcc] %v389_v19 }
  0xad   : > { %v1104_v20 = vld [vmem:[#allocation2 + $0x8] ss:$12 sps:$4 sm:$0xff]  }
  0xae   : > { %v1105_v21 = vld [vmem:[#allocation2 + $0x4] ss:$12 sps:$4 sm:$0xff]   ;;  %v1107_v22 = vld [vmem:[#allocation2] ss:$12 sps:$4 sm:$0xff]   ;;  %1054 = vmatpush3.bf16.msra.mxu1 %v1104_v20 }
  0xaf   : > { %635 = vmatprep.subr.bf16.mxu0 %v1105_v21  ;;  %1059 = vmatprep.subr.bf16.mxu1 %v1143_v11  ;;  %v565_v26 = vpop.permute.xlu0 %564 }
  0xb0   : > { %636 = vmatpush1.bf16.msra.mxu0 %v1107_v22 }
  0xb1   : > { %1056 = vmatmul.mubr.msk.bf16.vlgmr.msra.gmra.mxu1 %vm607_vm11, %v550_v23 }
  0xb2   : > { %1061 = vmatprep.mubr.msk.bf16.mxu1 %vm1150_vm0, %v1143_v11 }
  0xb3   : > { %1023 = vmatmul.mubr.msk.bf16.vlgmr.msra.gmra.mxu0 %vm607_vm11, %v550_v23 }
  0xb4   : > { %760 = vmatprep.mubr.bf16.mxu0 %v1151_v15 }
 0x10a   : > { %v713_v47 = vpop.permute.xlu1 %712 }
 0x10e   : > { %v820_v2 = vpop.permute.xlu1 %819 }
 0x171   : > { %v696_v27 = vpop.f32.mrf.mxu1 }
 0x172   : > { %v697_v28 = vadd.f32 %v696_v27, %v565_v26 }
 0x173   : > { %v655_v29 = vpop.f32.mrf.mxu0  ;;  %v1057_v30 = vpop.f32.mrf.mxu1 }
 0x174   : > { %1108 = vtanh.f32 %v697_v28  ;;  %v656_v31 = vadd.f32 %v655_v29, %v565_v26 }
 0x175   : > { %v657_v32 = vpop.f32.mrf.mxu0  ;;  %v699_v33 = vpop.f32.mrf.mxu1 }
 0x176   : > { %1110 = vtanh.f32 %v656_v31  ;;  %v658_v34 = vadd.f32 %v657_v32, %v565_v26 }
 0x177   : > { %v659_v35 = vpop.f32.mrf.mxu0  ;;  %v1058_v36 = vpop.f32.mrf.mxu1 }
 0x178   : > { %1112 = vtanh.f32 %v658_v34 }
 0x179   : > { %v660_v37 = vpop.f32.mrf.mxu0 }
 0x181   : > { %v1109_v38 = vpop.eup %1108 }
 0x182   : > { %v708_v39 = vpack.c.bf16 %v1109_v38, %v1109_v38 }
 0x183   : > { %v1111_v40 = vpop.eup %1110 }
 0x184   : > { %v706_v41 = vpack.c.bf16 %v1111_v40, %v1111_v40  ;;  %v726_v42 = vsel %vm611_vm6, %v708_v39, 0 }
 0x185   : > { %v1113_v43 = vpop.eup %1112  ;;  %1060 = vmatpush3.bf16.msra.mxu1 %v726_v42 }
 0x186   : > { %v707_v45 = vpack.c.bf16 %v1113_v43, %v1113_v43  ;;  %1065 = vmatprep.subr.bf16.mxu1 %v1143_v11  ;;  %v720_v46 = vsel %vm611_vm6, %v706_v41, 0 }
 0x188   : > { %1025 = vmatprep.subr.msk.bf16.mxu0 %vm611_vm6, %v707_v45  ;;  %1062 = vmatmul.mubr.msk.bf16.vlgmr.msra.gmra.mxu1 %vm715_vm12, %v705_v44 }
 0x189   : > { %743 = vmatpush1.bf16.msra.mxu0 %v720_v46  ;;  %1067 = vmatprep.mubr.msk.bf16.mxu1 %vm1150_vm0, %v1143_v11 }
 0x18c   : > { %1026 = vmatmul.mubr.msk.bf16.vlgmr.msra.gmra.mxu0 %vm715_vm12, %v705_v44 }
 0x18d   : > { %866 = vmatprep.mubr.bf16.mxu0 %v1151_v15 }
 0x248   : > { %v803_v48 = vpop.f32.mrf.mxu1 }
 0x249   : > { %v804_v49 = vadd.f32 %v803_v48, %v713_v47 }
 0x24a   : > { %v1063_v50 = vpop.f32.mrf.mxu1 }
 0x24b   : > { %1114 = vtanh.f32 %v804_v49 }
 0x24c   : > { %v762_v51 = vpop.f32.mrf.mxu0  ;;  %v806_v52 = vpop.f32.mrf.mxu1 }
 0x24d   : > { %v763_v53 = vadd.f32 %v762_v51, %v713_v47 }
 0x24e   : > { %v764_v54 = vpop.f32.mrf.mxu0  ;;  %v1064_v55 = vpop.f32.mrf.mxu1 }
 0x24f   : > { %1116 = vtanh.f32 %v763_v53  ;;  %v765_v56 = vadd.f32 %v764_v54, %v713_v47 }
 0x250   : > { %v766_v57 = vpop.f32.mrf.mxu0 }
 0x251   : > { %1118 = vtanh.f32 %v765_v56 }
 0x252   : > { %v767_v58 = vpop.f32.mrf.mxu0 }
 0x258   : > { %v1115_v11 = vpop.eup %1114 }
 0x259   : > { %v815_v59 = vpack.c.bf16 %v1115_v11, %v1115_v11 }
 0x25b   : > { %v832_v60 = vsel %vm611_vm6, %v815_v59, 0 }
 0x25c   : > { %v1117_v15 = vpop.eup %1116  ;;  %1066 = vmatpush3.bf16.msra.mxu1 %v832_v60 }
 0x25d   : > { %v813_v62 = vpack.c.bf16 %v1117_v15, %v1117_v15 }
 0x25e   : > { %v1119_v63 = vpop.eup %1118 }
 0x25f   : > { %v814_v0 = vpack.c.bf16 %v1119_v63, %v1119_v63  ;;  %1068 = vmatmul.mubr.msk.bf16.vlgmr.msra.gmra.mxu1 %vm715_vm12, %v812_v61  ;;  %v826_v1 = vsel %vm611_vm6, %v813_v62, 0 }
 0x261   : > { %1028 = vmatprep.subr.msk.bf16.mxu0 %vm611_vm6, %v814_v0 }
 0x262   : > { %849 = vmatpush1.bf16.msra.mxu0 %v826_v1 }
 0x265   : > { %1029 = vmatmul.mubr.msk.bf16.vlgmr.msra.gmra.mxu0 %vm715_vm12, %v812_v61 }
 0x31f   : > { %v909_v3 = vpop.f32.mrf.mxu1 }
 0x320   : > { %v910_v4 = vadd.f32 %v909_v3, %v820_v2 }
 0x321   : > { %v1069_v5 = vpop.f32.mrf.mxu1 }
 0x322   : > { %v1033_v6 = vmul.f32 -1.442695, %v910_v4 }
 0x323   : > { %v912_v7 = vpop.f32.mrf.mxu1 }
 0x324   : > { %1120 = vpow2.f32 %v1033_v6 }
 0x325   : > { %v868_v8 = vpop.f32.mrf.mxu0  ;;  %v1070_v9 = vpop.f32.mrf.mxu1 }
 0x326   : > { %v869_v10 = vadd.f32 %v868_v8, %v820_v2 }
 0x327   : > { %v870_v12 = vpop.f32.mrf.mxu0 }
 0x328   : > { %v1031_v13 = vmul.f32 -1.442695, %v869_v10  ;;  %v871_v14 = vadd.f32 %v870_v12, %v820_v2 }
 0x329   : > { %v872_v16 = vpop.f32.mrf.mxu0 }
 0x32a   : > { %1122 = vpow2.f32 %v1031_v13  ;;  %v1032_v17 = vmul.f32 -1.442695, %v871_v14 }
 0x32b   : > { %v873_v18 = vpop.f32.mrf.mxu0 }
 0x32c   : > { %1124 = vpow2.f32 %v1032_v17 }
 0x331   : > { %v1121_v19 = vpop.eup %1120 }
 0x332   : > { %v926_v20 = vadd.f32 1.0, %v1121_v19 }
 0x334   : > { %1126 = vrcp.f32 %v926_v20 }
 0x337   : > { %v1123_v21 = vpop.eup %1122 }
 0x338   : > { %v924_v22 = vadd.f32 1.0, %v1123_v21 }
 0x339   : > { %v1125_v23 = vpop.eup %1124 }
 0x33a   : > { %v925_v24 = vadd.f32 1.0, %v1125_v23  ;;  %1128 = vrcp.f32 %v924_v22 }
 0x33c   : > { %1130 = vrcp.f32 %v925_v24 }
 0x341   : > { %v1127_v25 = vpop.eup %1126 }
 0x342   : > { %v1040_v26 = vpack.c.bf16 %v1127_v25, %v1127_v25 }
 0x344   : > { %947 = vst [vmem:[%s278_s9 + $0x8] sm:$0x7] %v1040_v26 }
 0x347   : > { %v1129_v27 = vpop.eup %1128 }
 0x349   : > { %v1131_v28 = vpop.eup %1130 }
 0x34a   : > { %v1039_v29 = vpack.c.bf16 %v1131_v28, %v1129_v27 }
 0x34c   : > { %946 = vst [vmem:[%s278_s9] sm:$0x77] %v1039_v29 }
 0x34d PF: > { %s17_s24 = sadd.s32 1, %s1138_s24  }
 0x34e   : > { %p14_p4 = scmp.ge.s32.totalorder %s17_s24, 4  }
 0x350   :  { %16 = sbr.rel (!%p14_p4) target bundleno = 1 (0x1), region = 78 }

</bundles_post_ra>
